<compile_context>
chip_gen: v6e
topology: v6e:2x2x1
jax: 0.10.0
libtpu: 0.0.40
codegen_flags: <defaults>
</compile_context>

<pallas_src>
import functools

import jax
import jax.numpy as jnp
from jax.experimental import pallas as pl
from jax.experimental.pallas import tpu as pltpu


def _round_up(x, m):
    return ((x + m - 1) // m) * m


def _pick_tile(dim, align, max_tile, prefer_align=None):
    """Pick a tile size (multiple of `align`, <= max_tile) minimizing pad waste.

    Preference order: (1) minimal padding waste, (2) prefer_align-aligned
    tiles (256 = MXU-native on v6e/v7x), (3) larger tiles (fewer grid steps).
    """
    dim_aligned = _round_up(dim, align)
    if dim_aligned <= max_tile:
        return dim_aligned  # one block covers the whole (aligned) dimension
    best_key, best_t = None, None
    t = align
    while t <= max_tile:
        waste = _round_up(dim, t) - dim
        not_pref = 0 if (prefer_align is None or t % prefer_align == 0) else 1
        key = (waste, not_pref, -t)
        if best_key is None or key < best_key:
            best_key, best_t = key, t
        t += align
    return best_t


# --------------------------------------------------------------------------
# Kernels
# --------------------------------------------------------------------------
def _linear_kernel_scratch(x_ref, w_ref, b_ref, o_ref, acc_ref):
    """General path: f32 accumulator scratch, cast in the epilogue."""
    k = pl.program_id(2)

    @pl.when(k == 0)
    def _init():
        # Fold the bias into the accumulator init (epilogue = cast + store).
        acc_ref[...] = jnp.broadcast_to(
            b_ref[...].astype(jnp.float32), acc_ref.shape
        )

    acc_ref[...] += jnp.dot(
        x_ref[...], w_ref[...], preferred_element_type=jnp.float32
    )

    @pl.when(k == pl.num_programs(2) - 1)
    def _finalize():
        o_ref[...] = acc_ref[...].astype(o_ref.dtype)


def _linear_kernel_inplace(x_ref, w_ref, b_ref, o_ref):
    """f32-output path: accumulate directly into the resident output tile."""
    k = pl.program_id(2)

    @pl.when(k == 0)
    def _init():
        o_ref[...] = jnp.broadcast_to(b_ref[...].astype(o_ref.dtype), o_ref.shape)

    o_ref[...] += jnp.dot(
        x_ref[...], w_ref[...], preferred_element_type=jnp.float32
    )


# --------------------------------------------------------------------------
# Parameter preparation (do ONCE at parameter-load time)
# --------------------------------------------------------------------------
def prepare_lr_params(weight, bias, *, max_tn=512, max_tk=1024,
                      use_bf16_operands=False):
    """Transpose, pad and (optionally) cast the nn.Linear parameters once.

    weight: (D_out, D_in) -- PyTorch nn.Linear layout
    bias:   (D_out,)
    Returns (w_padded (K, N), bias_2d (1, N) f32, meta dict of static ints).
    """
    D_out, D_in = weight.shape
    tn = _pick_tile(D_out, 128, max_tn, prefer_align=256)
    tk = _pick_tile(D_in, 128, max_tk, prefer_align=256)
    N = _round_up(D_out, tn)
    K = _round_up(D_in, tk)

    w_t = weight.T  # (D_in, D_out): lane-dense RHS, no in-kernel transpose
    if (K, N) != (D_in, D_out):
        w_t = jnp.pad(w_t, ((0, K - D_in), (0, N - D_out)))
    op_dtype = jnp.bfloat16 if use_bf16_operands else weight.dtype
    w_p = w_t.astype(op_dtype)

    b_p = bias.astype(jnp.float32)
    if N != D_out:
        b_p = jnp.pad(b_p, (0, N - D_out))
    b2d = b_p.reshape(1, N)

    meta = dict(
        d_in=int(D_in),
        d_out=int(D_out),
        tn=int(tn),
        tk=int(tk),
        use_bf16=bool(use_bf16_operands),
    )
    return w_p, b2d, meta


# --------------------------------------------------------------------------
# Jitted apply
# --------------------------------------------------------------------------
@functools.partial(
    jax.jit,
    static_argnames=("tm", "tn", "tk", "d_out", "use_bf16", "input_buffer_count"),
)
def _lr_apply(x, w_p, b2d, *, tm, tn, tk, d_out, use_bf16, input_buffer_count):
    B, D_in = x.shape
    K, N = w_p.shape
    M = _round_up(B, tm)

    x_p = x
    if (M, K) != (B, D_in):
        x_p = jnp.pad(x, ((0, M - B), (0, K - D_in)))
    if use_bf16:
        x_p = x_p.astype(jnp.bfloat16)

    out_dtype = x.dtype
    use_scratch = out_dtype != jnp.float32
    kernel = _linear_kernel_scratch if use_scratch else _linear_kernel_inplace
    scratch_shapes = [pltpu.VMEM((tm, tn), jnp.float32)] if use_scratch else []

    in_bytes = jnp.dtype(x_p.dtype).itemsize
    out_bytes = jnp.dtype(out_dtype).itemsize

    # Double-buffered VMEM footprint estimate (+ optional scratch); give the
    # compiler 2x headroom but stay well under v7x's 64 MiB physical VMEM.
    vmem_est = 2 * ((tm * tk + tk * tn) * in_bytes + tn * 4 + tm * tn * out_bytes)
    if use_scratch:
        vmem_est += tm * tn * 4
    vmem_limit = int(min(max(2 * vmem_est, 32 * 1024 * 1024), 48 * 1024 * 1024))

    grid = (M // tm, N // tn, K // tk)

    def _in_spec(shape, index_map):
        if input_buffer_count != 2:
            return pl.BlockSpec(
                shape, index_map, pipeline_mode=pl.Buffered(input_buffer_count)
            )
        return pl.BlockSpec(shape, index_map)

    cost = pl.CostEstimate(
        flops=2 * M * N * K,
        transcendentals=0,
        bytes_accessed=(M * K + K * N) * in_bytes + M * N * out_bytes + N * 4,
    )

    out = pl.pallas_call(
        kernel,
        out_shape=jax.ShapeDtypeStruct((M, N), out_dtype),
        grid=grid,
        in_specs=[
            _in_spec((tm, tk), lambda i, j, k: (i, k)),   # x
            _in_spec((tk, tn), lambda i, j, k: (k, j)),   # W^T (pre-transposed)
            pl.BlockSpec((1, tn), lambda i, j, k: (0, j)),  # bias
        ],
        out_specs=pl.BlockSpec((tm, tn), lambda i, j, k: (i, j)),
        scratch_shapes=scratch_shapes,
        compiler_params=pltpu.CompilerParams(
            dimension_semantics=("parallel", "parallel", "arbitrary"),
            vmem_limit_bytes=vmem_limit,
        ),
        cost_estimate=cost,
    )(x_p, w_p, b2d)

    # Strip padding.
    return out[:B, :d_out]


def lr_forward_prepared(x, w_p, b2d, meta, *, max_tm=512, input_buffer_count=2):
    """Apply the linear layer with pre-prepared (transposed/padded) params."""
    B = x.shape[0]
    tn, tk = meta["tn"], meta["tk"]
    N = w_p.shape[1]

    tm = _pick_tile(B, 8, max_tm)
    M = _round_up(B, tm)
    # v7x megacore: if both parallel axes collapse to one block and M is big
    # enough, split M so the second TensorCore gets work (tiny shapes skip).
    if (M // tm == 1) and (N // tn == 1) and (M >= 16) and (tm >= 16):
        tm = _round_up(max(8, tm // 2), 8)

    return _lr_apply(
        x, w_p, b2d,
        tm=int(tm), tn=int(tn), tk=int(tk),
        d_out=meta["d_out"], use_bf16=meta["use_bf16"],
        input_buffer_count=int(input_buffer_count),
    )


def lr_forward(x, weight, bias, *, use_bf16_operands=False,
               max_tm=512, max_tn=512, max_tk=1024, input_buffer_count=2):
    """Convenience one-shot wrapper: out = x @ weight.T + bias."""
    w_p, b2d, meta = prepare_lr_params(
        weight, bias, max_tn=max_tn, max_tk=max_tk,
        use_bf16_operands=use_bf16_operands,
    )
    return lr_forward_prepared(
        x, w_p, b2d, meta, max_tm=max_tm, input_buffer_count=input_buffer_count
    )


if __name__ == "__main__":
    # Small shapes consistent with the module: LR(input_size=32, output_size=16)
    batch, input_size, output_size = 8, 32, 16

    key = jax.random.PRNGKey(0)
    kx, kw, kb = jax.random.split(key, 3)

    # Deterministic parameter init mimicking nn.Linear's default
    # uniform(-1/sqrt(in), 1/sqrt(in)) initialization.
    bound = 1.0 / jnp.sqrt(jnp.float32(input_size))
    weight = jax.random.uniform(
        kw, (output_size, input_size), jnp.float32, minval=-bound, maxval=bound
    )
    bias = jax.random.uniform(
        kb, (output_size,), jnp.float32, minval=-bound, maxval=bound
    )
    x = jax.random.normal(kx, (batch, input_size), jnp.float32)

    ref = x @ weight.T + bias

    # ---- f32 path (in-place accumulation kernel), params prepared once ----
    w_p, b2d, meta = prepare_lr_params(weight, bias)
    out = lr_forward_prepared(x, w_p, b2d, meta)
    out = jax.block_until_ready(out)
    assert out.shape == (batch, output_size)
    assert jnp.allclose(out, ref, atol=1e-5, rtol=1e-5)

    # ---- bf16-operand path (scratch-accumulator kernel), loose tolerance ----
    out_bf16 = lr_forward(
        x.astype(jnp.bfloat16), weight, bias, use_bf16_operands=True
    )
    out_bf16 = jax.block_until_ready(out_bf16)
    assert out_bf16.shape == (batch, output_size)
    assert jnp.allclose(
        out_bf16.astype(jnp.float32), ref, atol=5e-2, rtol=5e-2
    )

    print("KERNEL_OK")
</pallas_src>

<mosaic_0001>
module attributes {stable_mosaic.version = 11 : i64} {
  func.func @_linear_kernel_inplace(%arg0: i32, %arg1: i32, %arg2: i32, %arg3: memref<8x128xf32, #tpu.memory_space<vmem>>, %arg4: memref<128x128xf32, #tpu.memory_space<vmem>>, %arg5: memref<1x128xf32, #tpu.memory_space<vmem>>, %arg6: memref<8x128xf32, #tpu.memory_space<vmem>>) attributes {dimension_semantics = [#tpu.dimension_semantics<parallel>, #tpu.dimension_semantics<parallel>, #tpu.dimension_semantics<arbitrary>], iteration_bounds = array<i64: 1, 1, 1>, scalar_prefetch = 0 : i64, scratch_operands = 0 : i64, tpu.core_type = #tpu.core_type<tc>, window_params = [{transform_indices = @transform_0, window_bounds = array<i64: 8, 128>}, {transform_indices = @transform_1, window_bounds = array<i64: 128, 128>}, {transform_indices = @transform_2, window_bounds = array<i64: 1, 128>}, {transform_indices = @transform_3, window_bounds = array<i64: 8, 128>}]} {
    %c0_i32 = arith.constant 0 : i32
    %0 = arith.cmpi eq, %arg2, %c0_i32 : i32
    %1 = arith.extui %0 : i1 to i32
    %c0_i32_0 = arith.constant 0 : i32
    %2 = arith.cmpi ne, %1, %c0_i32_0 : i32
    scf.if %2 {
      %c0_8 = arith.constant 0 : index
      %c0_9 = arith.constant 0 : index
      %9 = vector.load %arg5[%c0_8, %c0_9] : memref<1x128xf32, #tpu.memory_space<vmem>>, vector<1x128xf32>
      %10 = vector.shape_cast %9 : vector<1x128xf32> to vector<1x128xf32>
      %11 = vector.broadcast %10 : vector<1x128xf32> to vector<8x128xf32>
      %c0_10 = arith.constant 0 : index
      %c0_11 = arith.constant 0 : index
      %12 = vector.load %arg6[%c0_10, %c0_11] : memref<8x128xf32, #tpu.memory_space<vmem>>, vector<8x128xf32>
      tpu.vector_store %arg6[%c0_10, %c0_11], %11 {strides = array<i32>} : memref<8x128xf32, #tpu.memory_space<vmem>>, vector<8x128xf32>,
    } else {
    }
    %c0 = arith.constant 0 : index
    %c0_1 = arith.constant 0 : index
    %3 = vector.load %arg6[%c0, %c0_1] : memref<8x128xf32, #tpu.memory_space<vmem>>, vector<8x128xf32>
    %c0_2 = arith.constant 0 : index
    %c0_3 = arith.constant 0 : index
    %4 = vector.load %arg3[%c0_2, %c0_3] : memref<8x128xf32, #tpu.memory_space<vmem>>, vector<8x128xf32>
    %c0_4 = arith.constant 0 : index
    %c0_5 = arith.constant 0 : index
    %5 = vector.load %arg4[%c0_4, %c0_5] : memref<128x128xf32, #tpu.memory_space<vmem>>, vector<128x128xf32>
    %cst = arith.constant dense<0.000000e+00> : vector<8x128xf32>
    %6 = tpu.matmul %4, %5, %cst {dimension_numbers = #tpu.dot_dimension_numbers<[1], [0], [0], [1], [0, 0, 1, 1], [], []>} : vector<8x128xf32>, vector<128x128xf32>, vector<8x128xf32> -> vector<8x128xf32>
    %7 = arith.addf %3, %6 : vector<8x128xf32>
    %c0_6 = arith.constant 0 : index
    %c0_7 = arith.constant 0 : index
    %8 = vector.load %arg6[%c0_6, %c0_7] : memref<8x128xf32, #tpu.memory_space<vmem>>, vector<8x128xf32>
    tpu.vector_store %arg6[%c0_6, %c0_7], %7 {strides = array<i32>} : memref<8x128xf32, #tpu.memory_space<vmem>>, vector<8x128xf32>,
    return
  }
  func.func @transform_0(%arg0: i32, %arg1: i32, %arg2: i32) -> (i32, i32) {
    %c0_i32 = arith.constant 0 : i32
    return %arg0, %arg2 : i32, i32
  }
  func.func @transform_1(%arg0: i32, %arg1: i32, %arg2: i32) -> (i32, i32) {
    %c0_i32 = arith.constant 0 : i32
    return %arg2, %arg1 : i32, i32
  }
  func.func @transform_2(%arg0: i32, %arg1: i32, %arg2: i32) -> (i32, i32) {
    %c0_i32 = arith.constant 0 : i32
    %c0_i32_0 = arith.constant 0 : i32
    return %c0_i32, %arg1 : i32, i32
  }
  func.func @transform_3(%arg0: i32, %arg1: i32, %arg2: i32) -> (i32, i32) {
    %c0_i32 = arith.constant 0 : i32
    return %arg0, %arg1 : i32, i32
  }
}

</mosaic_0001>

<bundles_post_ra>
// kernel: _lr_apply.1
= control target key start
LH: loop header
LB: loop body
LE: loop exit
PB: predicated region body
PF: predicated region fallthrough
CT: control target
= control target key end

     0   :  { %8 = vsyncpa [#allocation3], 0  ;;  %s287_s0 = inlined_call_operand.vmem [shape: f32[8,128], index: 0, kind: input, shape index: {}]   ;;  %s288_s1 = inlined_call_operand.hbm [shape: f32[128,128], index: 1, kind: input, shape index: {}]   ;;  %s289_s2 = inlined_call_operand.vmem [shape: f32[1,128], index: 2, kind: input, shape index: {}]   ;;  %s290_s3 = inlined_call_operand.hbm [shape: f32[8,128], index: 3, kind: output, shape index: {}]  }
   0x1   :  { %9 = vsyncpa [#allocation4], 0  ;;  %s249_s12 = smov [#allocation2]  }
   0x2   :  { %s17_s13 = sshll.u32 %s249_s12, 4  ;;  %s18_s13 = int_to_ptr.vmem [resolvable:$true] %s17_s13 }
   0x3   :  { %s213_s14 = scalar_lea.vmem %s18_s13, 2048  ;;  %p218_p1 = scmp.lt.s32.totalorder %s18_s13, %s18_s13 }
   0x4   :  { %p214_p0 = scmp.ne.s32.totalorder %s18_s13, %s213_s14  ;;  %p219_p2 = scmp.lt.s32.totalorder %s213_s14, %s213_s14 }
   0x6   :  { %p220_p3 = por %p219_p2, %p218_p1 }
   0x8   :  { %p221_p4 = pnand %p220_p3, %p214_p0 }
   0xa   :  { %224 = shalt.err (!%p221_p4)
}
   0xb   :  { %s250_s15 = smov 128   ;;  %s251_s16 = smov 8  }
   0xc   :  { %23 = dma.hbm_to_vmem [thread:$0]  %s288_s1, 2048, %s18_s13, [#allocation3], %s250_s15, %s250_s15, %s251_s16  }
   0xd   :  { %245 = dma.done.wait [#allocation3], 2048  }
   0xe   :  { %246 = vsyncadd [#allocation3], 4294965248  ;;  %v252_v0 = vmov 0.0   ;;  %vm253_vm0 = vmmov 0   ;;  %v58_v1 = vld [vmem:[#allocation2 + $0x78] sm:$0xff]  ;;  %v57_v2 = vld [vmem:[#allocation2 + $0x70] sm:$0xff] }
   0xf   :  { %164 = vmatprep.subr.mxu0 %v252_v0  ;;  %196 = vmatprep.mubr.msk.f32.mxu0 %vm253_vm0, %v252_v0  ;;  %v56_v3 = vld [vmem:[#allocation2 + $0x68] sm:$0xff]  ;;  %v55_v4 = vld [vmem:[#allocation2 + $0x60] sm:$0xff]  ;;  %v54_v5 = vld [vmem:[#allocation2 + $0x58] sm:$0xff]  ;;  %s254_s22 = smov [#allocation5]  }
  0x10   :  { %165 = vmatpush3.msra.mxu0 %v58_v1  ;;  %v53_v6 = vld [vmem:[#allocation2 + $0x50] sm:$0xff]  ;;  %v52_v7 = vld [vmem:[#allocation2 + $0x48] sm:$0xff]  ;;  %v51_v8 = vld [vmem:[#allocation2 + $0x40] sm:$0xff]  ;;  %s137_s23 = sshll.u32 %s254_s22, 4  ;;  %s138_s23 = int_to_ptr.vmem [resolvable:$true] %s137_s23 }
  0x11   :  { %166 = vmatprep.subr.mxu0 %v252_v0  ;;  %v50_v9 = vld [vmem:[#allocation2 + $0x38] sm:$0xff]  ;;  %v49_v10 = vld [vmem:[#allocation2 + $0x30] sm:$0xff]  ;;  %v48_v11 = vld [vmem:[#allocation2 + $0x28] sm:$0xff]  ;;  %s225_s24 = scalar_lea.vmem %s138_s23, 128  ;;  %p230_p6 = scmp.lt.s32.totalorder %s138_s23, %s138_s23 }
  0x12   :  { %167 = vmatpush3.msra.mxu0 %v57_v2  ;;  %v47_v12 = vld [vmem:[#allocation2 + $0x20] sm:$0xff]  ;;  %v46_v13 = vld [vmem:[#allocation2 + $0x18] sm:$0xff]  ;;  %v45_v14 = vld [vmem:[#allocation2 + $0x10] sm:$0xff]  ;;  %p226_p5 = scmp.ne.s32.totalorder %s138_s23, %s225_s24  ;;  %p231_p7 = scmp.lt.s32.totalorder %s225_s24, %s225_s24 }
  0x13   :  { %168 = vmatprep.subr.mxu0 %v252_v0  ;;  %v44_v15 = vld [vmem:[#allocation2 + $0x8] sm:$0xff]  ;;  %v43_v16 = vld [vmem:[#allocation2] sm:$0xff] }
  0x14   :  { %169 = vmatpush3.msra.mxu0 %v56_v3  ;;  %v42_v17 = vld [vmem:[%s287_s0] sm:$0xff]  ;;  %p232_p8 = por %p231_p7, %p230_p6 }
  0x15   :  { %170 = vmatprep.subr.mxu0 %v252_v0  ;;  %v146_v18 = vld [vmem:[%s289_s2] ss:$0 sm:$0xff] }
  0x16   :  { %171 = vmatpush3.msra.mxu0 %v55_v4  ;;  %p233_p9 = pnand %p232_p8, %p226_p5 }
  0x17   :  { %172 = vmatprep.subr.mxu0 %v252_v0 }
  0x18   :  { %173 = vmatpush3.msra.mxu0 %v54_v5 }
  0x19   :  { %174 = vmatprep.subr.mxu0 %v252_v0 }
  0x1a   :  { %175 = vmatpush3.msra.mxu0 %v53_v6 }
  0x1b   :  { %176 = vmatprep.subr.mxu0 %v252_v0 }
  0x1c   :  { %177 = vmatpush3.msra.mxu0 %v52_v7 }
  0x1d   :  { %178 = vmatprep.subr.mxu0 %v252_v0 }
  0x1e   :  { %179 = vmatpush3.msra.mxu0 %v51_v8 }
  0x1f   :  { %180 = vmatprep.subr.mxu0 %v252_v0 }
  0x20   :  { %181 = vmatpush3.msra.mxu0 %v50_v9 }
  0x21   :  { %182 = vmatprep.subr.mxu0 %v252_v0 }
  0x22   :  { %183 = vmatpush3.msra.mxu0 %v49_v10 }
  0x23   :  { %184 = vmatprep.subr.mxu0 %v252_v0 }
  0x24   :  { %185 = vmatpush3.msra.mxu0 %v48_v11 }
  0x25   :  { %186 = vmatprep.subr.mxu0 %v252_v0 }
  0x26   :  { %187 = vmatpush3.msra.mxu0 %v47_v12 }
  0x27   :  { %188 = vmatprep.subr.mxu0 %v252_v0 }
  0x28   :  { %189 = vmatpush3.msra.mxu0 %v46_v13 }
  0x29   :  { %190 = vmatprep.subr.mxu0 %v252_v0 }
  0x2a   :  { %191 = vmatpush3.msra.mxu0 %v45_v14 }
  0x2b   :  { %192 = vmatprep.subr.mxu0 %v252_v0 }
  0x2c   :  { %193 = vmatpush3.msra.mxu0 %v44_v15 }
  0x2d   :  { %194 = vmatprep.subr.mxu0 %v252_v0 }
  0x2e   :  { %195 = vmatpush3.msra.mxu0 %v43_v16 }
  0x2f   :  { %197 = vmatmul.mubr.f32.vlgmr.msra.gmra.mxu0 %v42_v17 }
  0xef   :  { %v125_v19 = vpop.f32.mrf.mxu0 }
  0xf0   :  { %v129_v20 = vadd.f32 %v146_v18, %v125_v19 }
  0xf1   :  { %v198_v21 = vpop.f32.mrf.mxu0 }
  0xf2   :  { %130 = vst [vmem:[#allocation5] sm:$0xff] %v129_v20 }
  0xf3   :  { %236 = shalt.err (!%p233_p9)
}
  0xf4   :  { %140 = dma.vmem_to_hbm [thread:$0]  %s138_s23, 128, %s290_s3, [#allocation4]  }
  0xf5   :  { %247 = dma.done.wait [#allocation4], 128  }
  0xf6   :  { %248 = vsyncadd [#allocation4], 4294967168 }
  0xf7   :  { %144 = vsyncpa [#allocation3], 1 }
  0xf8   :  { %145 = vsyncpa [#allocation4], 1 }

</bundles_post_ra>
